<compile_context>
chip_gen: v5e
topology: v5e:2x2
jax: 0.10.0
libtpu: 0.0.40
codegen_flags: <defaults>
</compile_context>

<pallas_src>
import jax
import jax.numpy as jnp
import numpy as np
from jax import lax
from jax.experimental import pallas as pl
from jax.experimental.pallas import tpu as pltpu


def _i32(x):
    """Wrap an arbitrary Python int to a two's-complement int32 (no numpy overflow warnings)."""
    x &= 0xFFFFFFFF
    if x >= 0x80000000:
        x -= 0x100000000
    return np.int32(x)


_K_WEYL_U = 0x9E3779B1           # odd scrambling constant (golden-ratio Weyl)
_K_WEYL = _i32(_K_WEYL_U)
_K_M1 = _i32(0x85EBCA6B)         # murmur3 fmix32 constants
_K_M2 = _i32(0xC2B2AE35)


def _triangular_kernel(seed_ref, bias_ref, q_ref, dist_ref, w_ref, mask_ref, sig_ref):
    # seed_ref: SMEM (1,) int32   bias_ref: SMEM (1,) f32
    # q_ref: (TB, N, D) query dtype   dist_ref: (N, N) f32 (already sqrt'ed)   w_ref: (1, D) f32
    # mask_ref: (TB, N, N) int8       sig_ref: (TB, N, 1) f32
    tb, n, _ = q_ref.shape

    # sigma = Linear(D, 1)(query): D is tiny, so VPU multiply + lane reduce (f32 accumulation),
    # batched over all TB folded heads; no N=1 MXU matmul.
    x = q_ref[...].astype(jnp.float32)                                    # (TB, N, D)
    sig = jnp.sum(x * w_ref[...], axis=-1, keepdims=True) + bias_ref[0]   # (TB, N, 1)
    sig_ref[...] = sig

    # u_d = dist / sigma^2: one reciprocal per (head, row), one multiply per mask element.
    inv = 1.0 / (sig * sig)                                               # (TB, N, 1)
    u_d = dist_ref[...][None, :, :] * inv                                 # (TB, N, N)

    # Uniform noise U in [0,1) from a counter-based hash of the *global* element index
    #   g = head_global * N*N + i * N + j,   h = fmix32(g * K + seed)
    # Pure int32 VPU ops (no pltpu.prng_*, which does not lower on the CPU/interpret backend),
    # no HBM uniform stream, identical samples for any head tiling / grid size.
    k_head = _i32(n * n * _K_WEYL_U)                                      # (N*N*K) mod 2^32
    off = seed_ref[0] + (pl.program_id(0) * tb) * k_head                  # scalar: seed + head0*K_head
    rc = (lax.broadcasted_iota(jnp.int32, (n, n), 0) * n
          + lax.broadcasted_iota(jnp.int32, (n, n), 1)) * _K_WEYL + off   # (N, N), shared by TB heads
    h = rc[None, :, :] + lax.broadcasted_iota(jnp.int32, (tb, n, n), 0) * k_head
    h = h ^ lax.shift_right_logical(h, np.int32(16))
    h = h * _K_M1
    h = h ^ lax.shift_right_logical(h, np.int32(13))
    h = h * _K_M2
    h = h ^ lax.shift_right_logical(h, np.int32(16))
    u = (h & np.int32(0x00FFFFFF)).astype(jnp.float32) * np.float32(1.0 / (1 << 24))

    # RelaxedBernoulli(T, probs).sample() > 0.5  ==  U > u_d  (any T > 0 cancels; differs from the
    # literal torch formulation only on ~eps boundary events).  sigma == 0 rows give u_d = inf/NaN,
    # so they compare False, matching the all-zero-probability row of the reference.
    mask_ref[...] = (u > u_d).astype(mask_ref.dtype)


def _pick_block_heads(bh, n, d, budget_bytes=24 << 20, min_steps=4):
    """Heads folded per grid step.  Sized so the double-buffered q/mask/sigma tiles plus ~3 live
    (TB, N, N) int32/f32 compute intermediates stay inside a v7x-safe VMEM budget (64 MiB/TC),
    while keeping at least `min_steps` grid steps (>= 2 per TensorCore under megacore).  No
    divisor constraint: the grid uses cdiv and Pallas clips the ragged last block."""
    per_head = 2 * (4 * n * d + n * n + 4 * n) + 3 * 4 * n * n   # 2x(q + int8 mask + sig) + intermediates
    shared = 2 * (4 * n * n + 4 * d)                             # distance table + sigma weight
    tb = int(max(1, min(bh, (budget_bytes - shared) // per_head)))
    if bh >= min_steps:
        tb = min(tb, max(1, bh // min_steps))
    return tb


def triangular_kernel_forward(query, dists_sq, weight, bias, temperature, seed=0):
    """query: (b,h,n,d) -> (mask (b,h,n,n) bool, sigmas (b,h,n,1) f32).

    `temperature` is accepted for API parity with the PyTorch module, but cannot affect the
    output: sample() > 0.5  <=>  (logits + logistic noise) / T > 0 for any T > 0."""
    del temperature
    b, h, n, d = query.shape
    bh = b * h
    tb = _pick_block_heads(bh, n, d)
    steps = pl.cdiv(bh, tb)

    q2 = query.reshape(bh, n, d)                                  # keep native dtype (no extra pass)
    dist = jnp.sqrt(jnp.asarray(dists_sq, jnp.float32))           # static table: sqrt hoisted out of kernel
    w2 = jnp.asarray(weight, jnp.float32).reshape(1, d)
    b2 = jnp.asarray(bias, jnp.float32).reshape(1)
    seed_arr = jnp.asarray([seed], jnp.int32)

    mask_i8, sig = pl.pallas_call(
        _triangular_kernel,
        out_shape=(jax.ShapeDtypeStruct((bh, n, n), jnp.int8),
                   jax.ShapeDtypeStruct((bh, n, 1), jnp.float32)),
        grid_spec=pltpu.PrefetchScalarGridSpec(
            num_scalar_prefetch=0,
            grid=(steps,),
            in_specs=[
                pl.BlockSpec(memory_space=pltpu.MemorySpace.SMEM),   # PRNG seed (1,) int32
                pl.BlockSpec(memory_space=pltpu.MemorySpace.SMEM),   # sigma_layer bias (1,) f32
                pl.BlockSpec((tb, n, d), lambda i: (i, 0, 0)),       # query, TB heads per step
                pl.BlockSpec((n, n), lambda i: (0, 0)),              # pairwise distances (shared)
                pl.BlockSpec((1, d), lambda i: (0, 0)),              # sigma_layer weight
            ],
            out_specs=[
                pl.BlockSpec((tb, n, n), lambda i: (i, 0, 0)),       # mask (int8 0/1)
                pl.BlockSpec((tb, n, 1), lambda i: (i, 0, 0)),       # sigmas
            ],
        ),
        compiler_params=pltpu.CompilerParams(
            dimension_semantics=("parallel",),
            vmem_limit_bytes=48 * 1024 * 1024),
    )(seed_arr, b2, q2, dist, w2)

    mask = (mask_i8 != 0).reshape(b, h, n, n)
    return mask, sig.reshape(b, h, n, 1)


def make_dists_sq(n_patches):
    """Replicates Kernel.get_pairwise_distances, reduced to squared L2 distances: (n+1, n+1)."""
    n_rows = n_cols = int(np.sqrt(n_patches))
    rows, cols = np.indices((n_rows, n_cols))
    token_idxs = np.stack([rows.flatten(), cols.flatten()], axis=-1)      # (n, 2)
    dists = token_idxs[:, None, :] - token_idxs[None, :, :]               # (n, n, 2)
    dists = np.pad(dists, ((1, 0), (1, 0), (0, 0)))                       # CLS row/col of zeros
    return jnp.asarray(np.sum(dists.astype(np.float32) ** 2, axis=-1))    # (n+1, n+1)


if __name__ == "__main__":
    key = jax.random.PRNGKey(0)

    # Shapes consistent with the module: hidden=32, heads=4 -> head_dim=8;
    # img 16x16 with 4x4 patches -> 16 patches -> n = 17 tokens (incl. CLS).
    b, h = 2, 4
    hidden_size, num_heads = 32, 4
    d = hidden_size // num_heads
    img_size, patch = (16, 16), 4
    n_patches = (img_size[0] // patch) * (img_size[1] // patch)
    n = n_patches + 1
    temperature = 0.5

    k_q, k_w, k_b = jax.random.split(key, 3)
    query = jax.random.normal(k_q, (b, h, n, d), dtype=jnp.float32)

    # Deterministic PyTorch-Linear-style init (uniform with bound 1/sqrt(fan_in)).
    bound = 1.0 / np.sqrt(d)
    w = jax.random.uniform(k_w, (d,), minval=-bound, maxval=bound, dtype=jnp.float32)
    bias = jax.random.uniform(k_b, (1,), minval=-bound, maxval=bound, dtype=jnp.float32)

    dists_sq = make_dists_sq(n_patches)

    mask, sigmas = triangular_kernel_forward(query, dists_sq, w, bias, temperature, seed=0)
    jax.block_until_ready((mask, sigmas))

    # Pure-JAX reference for the deterministic part (sigma linear layer).
    sig_ref = jnp.einsum("bhnd,d->bhn", query, w) + bias[0]

    assert mask.shape == (b, h, n, n) and mask.dtype == jnp.bool_
    assert sigmas.shape == (b, h, n, 1)
    assert bool(jnp.allclose(sigmas[..., 0], sig_ref, rtol=1e-5, atol=1e-5))

    # Triangular kernel support check: zero probability outside |u| <= 1, so no sampled
    # connection may have dist / sigma^2 >= 1 (small slack for rounding differences).
    u_d_ref = jnp.sqrt(dists_sq)[None, None, :, :] / (sigmas.astype(jnp.float32) ** 2)
    assert not bool(jnp.any(mask & (u_d_ref >= 1.0 + 1e-5)))

    # Diagonal (distance 0) is sampled with probability ~1.
    diag = mask[:, :, jnp.arange(n), jnp.arange(n)]
    assert float(jnp.mean(diag.astype(jnp.float32))) > 0.9

    print("KERNEL_OK")
</pallas_src>

<mosaic_0001>
module attributes {stable_mosaic.version = 11 : i64} {
  func.func @_triangular_kernel(%arg0: i32, %arg1: memref<1xi32, #tpu.memory_space<smem>>, %arg2: memref<1xf32, #tpu.memory_space<smem>>, %arg3: memref<2x17x8xf32, #tpu.memory_space<vmem>>, %arg4: memref<17x17xf32, #tpu.memory_space<vmem>>, %arg5: memref<1x8xf32, #tpu.memory_space<vmem>>, %arg6: memref<2x17x17xi8, #tpu.memory_space<vmem>>, %arg7: memref<2x17x1xf32, #tpu.memory_space<vmem>>) attributes {dimension_semantics = [#tpu.dimension_semantics<parallel>], iteration_bounds = array<i64: 4>, scalar_prefetch = 0 : i64, scratch_operands = 0 : i64, tpu.core_type = #tpu.core_type<tc>, window_params = [{transform_indices = @transform_0, window_bounds = array<i64: 1>}, {transform_indices = @transform_1, window_bounds = array<i64: 1>}, {transform_indices = @transform_2, window_bounds = array<i64: 2, 17, 8>}, {pipeline_mode = #tpu.pipeline_mode<synchronous>, transform_indices = @transform_3, window_bounds = array<i64: 17, 17>}, {pipeline_mode = #tpu.pipeline_mode<synchronous>, transform_indices = @transform_4, window_bounds = array<i64: 1, 8>}, {transform_indices = @transform_5, window_bounds = array<i64: 2, 17, 17>}, {transform_indices = @transform_6, window_bounds = array<i64: 2, 17, 1>}]} {
    %c0 = arith.constant 0 : index
    %c0_0 = arith.constant 0 : index
    %c0_1 = arith.constant 0 : index
    %0 = vector.load %arg3[%c0, %c0_0, %c0_1] : memref<2x17x8xf32, #tpu.memory_space<vmem>>, vector<2x17x8xf32>
    %c0_2 = arith.constant 0 : index
    %c0_3 = arith.constant 0 : index
    %1 = vector.load %arg5[%c0_2, %c0_3] : memref<1x8xf32, #tpu.memory_space<vmem>>, vector<1x8xf32>
    %2 = vector.shape_cast %1 : vector<1x8xf32> to vector<1x1x8xf32>
    %3 = vector.broadcast %2 : vector<1x1x8xf32> to vector<2x17x8xf32>
    %4 = arith.mulf %0, %3 : vector<2x17x8xf32>
    %cst = arith.constant dense<0.000000e+00> : vector<2x17xf32>
    %5 = vector.multi_reduction <add>, %4, %cst [2] : vector<2x17x8xf32> to vector<2x17xf32>
    %6 = vector.shape_cast %5 : vector<2x17xf32> to vector<2x17x1xf32>
    %c0_4 = arith.constant 0 : index
    %7 = memref.load %arg2[%c0_4] : memref<1xf32, #tpu.memory_space<smem>>
    %8 = vector.broadcast %7 : f32 to vector<2x17x1xf32>
    %9 = arith.addf %6, %8 : vector<2x17x1xf32>
    %c0_5 = arith.constant 0 : index
    %c0_6 = arith.constant 0 : index
    %c0_7 = arith.constant 0 : index
    %10 = vector.load %arg7[%c0_5, %c0_6, %c0_7] : memref<2x17x1xf32, #tpu.memory_space<vmem>>, vector<2x17x1xf32>
    tpu.vector_store %arg7[%c0_5, %c0_6, %c0_7], %9 {strides = array<i32>} : memref<2x17x1xf32, #tpu.memory_space<vmem>>, vector<2x17x1xf32>,
    %11 = arith.mulf %9, %9 : vector<2x17x1xf32>
    %cst_8 = arith.constant 1.000000e+00 : f32
    %12 = vector.broadcast %cst_8 : f32 to vector<2x17x1xf32>
    %13 = arith.divf %12, %11 : vector<2x17x1xf32>
    %c0_9 = arith.constant 0 : index
    %c0_10 = arith.constant 0 : index
    %14 = vector.load %arg4[%c0_9, %c0_10] : memref<17x17xf32, #tpu.memory_space<vmem>>, vector<17x17xf32>
    %15 = vector.shape_cast %14 : vector<17x17xf32> to vector<1x17x17xf32>
    %16 = vector.broadcast %15 : vector<1x17x17xf32> to vector<2x17x17xf32>
    %17 = vector.broadcast %13 : vector<2x17x1xf32> to vector<2x17x17xf32>
    %18 = arith.mulf %16, %17 : vector<2x17x17xf32>
    %c0_11 = arith.constant 0 : index
    %19 = memref.load %arg1[%c0_11] : memref<1xi32, #tpu.memory_space<smem>>
    %c2_i32 = arith.constant 2 : i32
    %20 = arith.muli %arg0, %c2_i32 : i32
    %c-1667211055_i32 = arith.constant -1667211055 : i32
    %21 = arith.muli %20, %c-1667211055_i32 : i32
    %22 = arith.addi %19, %21 : i32
    %23 = tpu.iota {dimensions = array<i32: 0>} : vector<17x17xi32>
    %c17_i32 = arith.constant 17 : i32
    %24 = vector.broadcast %c17_i32 : i32 to vector<17x17xi32>
    %25 = arith.muli %23, %24 : vector<17x17xi32>
    %26 = tpu.iota {dimensions = array<i32: 1>} : vector<17x17xi32>
    %27 = arith.addi %25, %26 : vector<17x17xi32>
    %c-1640531535_i32 = arith.constant -1640531535 : i32
    %28 = vector.broadcast %c-1640531535_i32 : i32 to vector<17x17xi32>
    %29 = arith.muli %27, %28 : vector<17x17xi32>
    %30 = vector.broadcast %22 : i32 to vector<17x17xi32>
    %31 = arith.addi %29, %30 : vector<17x17xi32>
    %32 = vector.shape_cast %31 : vector<17x17xi32> to vector<1x17x17xi32>
    %33 = tpu.iota {dimensions = array<i32: 0>} : vector<2x17x17xi32>
    %c-1667211055_i32_12 = arith.constant -1667211055 : i32
    %34 = vector.broadcast %c-1667211055_i32_12 : i32 to vector<2x17x17xi32>
    %35 = arith.muli %33, %34 : vector<2x17x17xi32>
    %36 = vector.broadcast %32 : vector<1x17x17xi32> to vector<2x17x17xi32>
    %37 = arith.addi %36, %35 : vector<2x17x17xi32>
    %c16_i32 = arith.constant 16 : i32
    %38 = vector.broadcast %c16_i32 : i32 to vector<2x17x17xi32>
    %39 = arith.shrui %37, %38 : vector<2x17x17xi32>
    %40 = arith.xori %37, %39 : vector<2x17x17xi32>
    %c-2048144789_i32 = arith.constant -2048144789 : i32
    %41 = vector.broadcast %c-2048144789_i32 : i32 to vector<2x17x17xi32>
    %42 = arith.muli %40, %41 : vector<2x17x17xi32>
    %c13_i32 = arith.constant 13 : i32
    %43 = vector.broadcast %c13_i32 : i32 to vector<2x17x17xi32>
    %44 = arith.shrui %42, %43 : vector<2x17x17xi32>
    %45 = arith.xori %42, %44 : vector<2x17x17xi32>
    %c-1028477387_i32 = arith.constant -1028477387 : i32
    %46 = vector.broadcast %c-1028477387_i32 : i32 to vector<2x17x17xi32>
    %47 = arith.muli %45, %46 : vector<2x17x17xi32>
    %c16_i32_13 = arith.constant 16 : i32
    %48 = vector.broadcast %c16_i32_13 : i32 to vector<2x17x17xi32>
    %49 = arith.shrui %47, %48 : vector<2x17x17xi32>
    %50 = arith.xori %47, %49 : vector<2x17x17xi32>
    %c16777215_i32 = arith.constant 16777215 : i32
    %51 = vector.broadcast %c16777215_i32 : i32 to vector<2x17x17xi32>
    %52 = arith.andi %50, %51 : vector<2x17x17xi32>
    %53 = arith.sitofp %52 : vector<2x17x17xi32> to vector<2x17x17xf32>
    %cst_14 = arith.constant 5.96046448E-8 : f32
    %54 = vector.broadcast %cst_14 : f32 to vector<2x17x17xf32>
    %55 = arith.mulf %53, %54 : vector<2x17x17xf32>
    %56 = arith.cmpf ogt, %55, %18 : vector<2x17x17xf32>
    %57 = arith.extui %56 : vector<2x17x17xi1> to vector<2x17x17xi8>
    %c0_15 = arith.constant 0 : index
    %c0_16 = arith.constant 0 : index
    %c0_17 = arith.constant 0 : index
    %58 = vector.load %arg6[%c0_15, %c0_16, %c0_17] : memref<2x17x17xi8, #tpu.memory_space<vmem>>, vector<2x17x17xi8>
    tpu.vector_store %arg6[%c0_15, %c0_16, %c0_17], %57 {strides = array<i32>} : memref<2x17x17xi8, #tpu.memory_space<vmem>>, vector<2x17x17xi8>,
    return
  }
  func.func @transform_0(%arg0: i32) -> i32 {
    %c0_i32 = arith.constant 0 : i32
    %c0_i32_0 = arith.constant 0 : i32
    return %c0_i32 : i32
  }
  func.func @transform_1(%arg0: i32) -> i32 {
    %c0_i32 = arith.constant 0 : i32
    %c0_i32_0 = arith.constant 0 : i32
    return %c0_i32 : i32
  }
  func.func @transform_2(%arg0: i32) -> (i32, i32, i32) {
    %c0_i32 = arith.constant 0 : i32
    %c0_i32_0 = arith.constant 0 : i32
    %c0_i32_1 = arith.constant 0 : i32
    return %arg0, %c0_i32, %c0_i32_0 : i32, i32, i32
  }
  func.func @transform_3(%arg0: i32) -> (i32, i32) {
    %c0_i32 = arith.constant 0 : i32
    %c0_i32_0 = arith.constant 0 : i32
    %c0_i32_1 = arith.constant 0 : i32
    return %c0_i32, %c0_i32_0 : i32, i32
  }
  func.func @transform_4(%arg0: i32) -> (i32, i32) {
    %c0_i32 = arith.constant 0 : i32
    %c0_i32_0 = arith.constant 0 : i32
    %c0_i32_1 = arith.constant 0 : i32
    return %c0_i32, %c0_i32_0 : i32, i32
  }
  func.func @transform_5(%arg0: i32) -> (i32, i32, i32) {
    %c0_i32 = arith.constant 0 : i32
    %c0_i32_0 = arith.constant 0 : i32
    %c0_i32_1 = arith.constant 0 : i32
    return %arg0, %c0_i32, %c0_i32_0 : i32, i32, i32
  }
  func.func @transform_6(%arg0: i32) -> (i32, i32, i32) {
    %c0_i32 = arith.constant 0 : i32
    %c0_i32_0 = arith.constant 0 : i32
    %c0_i32_1 = arith.constant 0 : i32
    return %arg0, %c0_i32, %c0_i32_0 : i32, i32, i32
  }
}

</mosaic_0001>

<bundles_post_ra>
// kernel: tpu_custom_call.1
= control target key start
LH: loop header
LB: loop body
LE: loop exit
PB: predicated region body
PF: predicated region fallthrough
CT: control target
= control target key end

     0   :  { %s761_s25 = smov 0   ;;  %s973_s0 = inlined_call_operand.<no memory space> [shape: s32[1], index: 0, kind: input, shape index: {}]   ;;  %s974_s1 = inlined_call_operand.<no memory space> [shape: f32[1], index: 1, kind: input, shape index: {}]   ;;  %s975_s2 = inlined_call_operand.vmem [shape: f32[8,17,8], index: 2, kind: input, shape index: {}]   ;;  %s976_s3 = inlined_call_operand.vmem [shape: f32[17,17], index: 3, kind: input, shape index: {}]   ;;  %s977_s4 = inlined_call_operand.vmem [shape: f32[1,8], index: 4, kind: input, shape index: {}]   ;;  %s978_s5 = inlined_call_operand.vmem [shape: s8[8,17,17], index: 5, kind: output, shape index: {0}]   ;;  %s979_s6 = inlined_call_operand.vmem [shape: f32[8,17,1], index: 6, kind: output, shape index: {1}]  }
   0x1   :  { %12 = sst [smem:[#allocation2]] %s973_s0 }
   0x2   :  { %13 = sst [smem:[#allocation3]] %s974_s1 }
   0x3 LB: > { %s674_s26 = sadd.s32 4294967295, %s717_s25   ;;  %p678_p0 = scmp.ge.s32.totalorder %s717_s25, 1  ;;  %s717_s25 = sphi %s761_s25, %s19_s25  }
   0x4   : > { %p219_p1 = scmp.lt.s32.totalorder %s717_s25, 5 }
   0x6   : > { %p220_p2 = pnand %p678_p0, %p219_p1 }
   0x7   : > { %s679_s0 = sshll.u32 (!%p220_p2), %s674_s26, 1  ;;  %s437_s8 = sld [smem:[#allocation2]] (!%p220_p2) }
   0x8   : > { %223 = sbr.rel (%p220_p2) target bundleno = 188 (0xbc), region = 40  ;;  %p258_p3 = scmp.lt.s32.totalorder (!%p220_p2), %s679_s0, 7 }
   0x9   : > { %s438_s9 = smul.u32 (!%p220_p2), 960545186, %s674_s26  ;;  %s316_s11 = sld [smem:[#allocation3]] (!%p220_p2) }
   0xd   : > { %s999_s0 = smov (!%p258_p3, %s679_s0), 7  ;;  %v698_v0 = vld [vmem:[%s977_s4] ss:$0 sm:$0xff]  ;;  %vm296_vm0 = vcmask 64512   ;;  %vm303_vm1 = vcmask 57344   ;;  %v440_v19 = vlaneseq  ;;  %s439_s10 = sadd.s32 %s438_s9, %s437_s8  ;;  %vm324_vm2 = vcmask 7168  }
   0xe   : > { %s687_s1 = smul.u32 24, %s999_s0  ;;  %v455_v26 = vstv %s439_s10  ;;  %vm327_vm3 = vcmask 0  }
   0xf   : > { %v441_v20 = vshrl.u32 %v440_v19, 7  ;;  %v448_v23 = vand.u32 127, %v440_v19  ;;  %s688_s21 = smul.u32 6, %s999_s0 }
  0x10   : > { %s262_s7 = scalar_lea.vmem %s975_s2, %s687_s1  ;;  %s795_s14 = scalar_lea.vmem %s979_s6, %s687_s1 }
  0x11   : > { %v284_v1 = vld [vmem:[%s262_s7 + $0x20] sm:$0xff]  ;;  %v282_v2 = vld [vmem:[%s262_s7 + $0x10] sm:$0x1]  ;;  %v285_v7 = vld [vmem:[%s262_s7 + $0x28] sm:$0x1]  ;;  %v442_v21 = vadd.s32 8, %v441_v20  ;;  %s269_s24 = scalar_lea.vmem %s978_s5, %s688_s21 }
  0x12   : > { %v280_v3 = vld [vmem:[%s262_s7] sm:$0xff]  ;;  %v294_v4 = vmul.f32 %v698_v0, %v284_v1  ;;  %v292_v5 = vmul.f32 %v698_v0, %v282_v2  ;;  %v283_v8 = vld [vmem:[%s262_s7 + $0x18] sm:$0xff]  ;;  %v281_v12 = vld [vmem:[%s262_s7 + $0x8] sm:$0xff]  ;;  %v295_v13 = vmul.f32 %v698_v0, %v285_v7  ;;  %v443_v27 = vadd.s32 16, %v441_v20 }
  0x13   : > { %v290_v6 = vmul.f32 %v698_v0, %v280_v3  ;;  %v293_v14 = vmul.f32 %v698_v0, %v283_v8  ;;  %v291_v15 = vmul.f32 %v698_v0, %v281_v12  ;;  %v445_v22 = vmul.u32 17, %v442_v21 }
  0x14   : > { %v310_v9 = vsel %vm296_vm0, %v294_v4, 0.0  ;;  %v304_v10 = vsel %vm303_vm1, %v292_v5, 0.0  ;;  %v313_v16 = vsel %vm303_vm1, %v295_v13, 0.0  ;;  %v446_v29 = vmul.u32 17, %v443_v27 }
  0x15   : > { %v297_v11 = vsel %vm296_vm0, %v290_v6, 0.0  ;;  %311 = vadd.xlane.f32.xlu2 %v310_v9  ;;  %305 = vadd.xlane.f32.xlu1 %v304_v10  ;;  %v307_v17 = vsel %vm296_vm0, %v293_v14, 0.0  ;;  %v300_v18 = vsel %vm296_vm0, %v291_v15, 0.0  ;;  %v450_v24 = vadd.s32 %v448_v23, %v445_v22 }
  0x16   : > { %298 = vadd.xlane.f32.xlu0 %v297_v11  ;;  %v444_v30 = vmul.u32 17, %v441_v20  ;;  %v451_v31 = vadd.s32 %v448_v23, %v446_v29  ;;  %v317_v12 = vstv %s316_s11 }
  0x17   : > { %v453_v25 = vmul.u32 2654435761, %v450_v24 }
  0x18   : > { %v449_v32 = vadd.s32 %v448_v23, %v444_v30  ;;  %v454_v34 = vmul.u32 2654435761, %v451_v31 }
  0x19   : > { %v457_v28 = vadd.s32 %v455_v26, %v453_v25 }
  0x1a   : > { %v452_v35 = vmul.u32 2654435761, %v449_v32  ;;  %v458_v37 = vadd.s32 %v455_v26, %v454_v34 }
  0x1b   : > { %v460_v33 = vadd.s32 2627756241, %v457_v28  ;;  %v463_v48 = vshrl.u32 %v457_v28, 16 }
  0x1c   : > { %v456_v38 = vadd.s32 %v455_v26, %v452_v35  ;;  %v464_v40 = vshrl.u32 %v458_v37, 16  ;;  %v461_v43 = vadd.s32 2627756241, %v458_v37 }
  0x1d   : > { %314 = vadd.xlane.f32.xlu2 %v313_v16  ;;  %308 = vadd.xlane.f32.xlu1 %v307_v17  ;;  %v466_v36 = vshrl.u32 %v460_v33, 16  ;;  %v469_v54 = vxor.u32 %v463_v48, %v457_v28 }
  0x1e   : > { %301 = vadd.xlane.f32.xlu0 %v300_v18  ;;  %v462_v41 = vshrl.u32 %v456_v38, 16  ;;  %v470_v44 = vxor.u32 %v464_v40, %v458_v37  ;;  %v459_v45 = vadd.s32 2627756241, %v456_v38  ;;  %v467_v47 = vshrl.u32 %v461_v43, 16 }
  0x1f   : > { %v472_v39 = vxor.u32 %v466_v36, %v460_v33  ;;  %v475_v61 = vmul.u32 2246822507, %v469_v54 }
  0x20   : > { %v468_v46 = vxor.u32 %v462_v41, %v456_v38  ;;  %v465_v49 = vshrl.u32 %v459_v45, 16  ;;  %v473_v51 = vxor.u32 %v467_v47, %v461_v43  ;;  %v476_v52 = vmul.u32 2246822507, %v470_v44 }
  0x21   : > { %v478_v42 = vmul.u32 2246822507, %v472_v39  ;;  %v481_v3 = vshrl.u32 %v475_v61, 13 }
  0x22   : > { %v471_v53 = vxor.u32 %v465_v49, %v459_v45  ;;  %v474_v55 = vmul.u32 2246822507, %v468_v46  ;;  %v479_v56 = vmul.u32 2246822507, %v473_v51  ;;  %v482_v59 = vshrl.u32 %v476_v52, 13 }
  0x23   : > { %v484_v50 = vshrl.u32 %v478_v42, 13  ;;  %v487_v9 = vxor.u32 %v481_v3, %v475_v61 }
  0x24   : > { %v477_v57 = vmul.u32 2246822507, %v471_v53  ;;  %v485_v60 = vshrl.u32 %v479_v56, 13  ;;  %v480_v62 = vshrl.u32 %v474_v55, 13  ;;  %v488_v1 = vxor.u32 %v482_v59, %v476_v52 }
  0x25   : > { %v490_v58 = vxor.u32 %v484_v50, %v478_v42  ;;  %v493_v18 = vmul.u32 3266489909, %v487_v9 }
  0x26   : > { %v483_v63 = vshrl.u32 %v477_v57, 13  ;;  %v491_v2 = vxor.u32 %v485_v60, %v479_v56  ;;  %v486_v4 = vxor.u32 %v480_v62, %v474_v55  ;;  %v494_v7 = vmul.u32 3266489909, %v488_v1 }
  0x27   : > { %v496_v0 = vmul.u32 3266489909, %v490_v58  ;;  %v499_v31 = vshrl.u32 %v493_v18, 16 }
  0x28   : > { %v489_v5 = vxor.u32 %v483_v63, %v477_v57  ;;  %v497_v8 = vmul.u32 3266489909, %v491_v2  ;;  %v492_v10 = vmul.u32 3266489909, %v486_v4  ;;  %v500_v15 = vshrl.u32 %v494_v7, 16 }
  0x29   : > { %v502_v6 = vshrl.u32 %v496_v0, 16  ;;  %v505_v39 = vxor.u32 %v499_v31, %v493_v18 }
  0x2a   : > { %v495_v11 = vmul.u32 3266489909, %v489_v5  ;;  %v503_v17 = vshrl.u32 %v497_v8, 16  ;;  %v498_v21 = vshrl.u32 %v492_v10, 16  ;;  %v506_v28 = vxor.u32 %v500_v15, %v494_v7 }
  0x2b   : > { %v508_v13 = vxor.u32 %v502_v6, %v496_v0  ;;  %v511_v54 = vand.u32 16777215, %v505_v39 }
  0x2c   : > { %v501_v23 = vshrl.u32 %v495_v11, 16  ;;  %v509_v30 = vxor.u32 %v503_v17, %v497_v8  ;;  %v504_v32 = vxor.u32 %v498_v21, %v492_v10  ;;  %v512_v35 = vand.u32 16777215, %v506_v28 }
  0x2d   : > { %v514_v25 = vand.u32 16777215, %v508_v13  ;;  %v849_v5 = vcvt.s32.f32 %v511_v54 }
  0x2e   : > { %v507_v33 = vxor.u32 %v501_v23, %v495_v11  ;;  %v515_v36 = vand.u32 16777215, %v509_v30  ;;  %v510_v40 = vand.u32 16777215, %v504_v32  ;;  %v518_v52 = vcvt.s32.f32 %v512_v35 }
  0x2f   : > { %v520_v34 = vcvt.s32.f32 %v514_v25 }
  0x30   : > { %v513_v42 = vand.u32 16777215, %v507_v33  ;;  %v521_v53 = vcvt.s32.f32 %v515_v36  ;;  %v830_v57 = vcvt.s32.f32 %v510_v40  ;;  %v845_v2 = vmul.f32 5.9604645e-08, %v518_v52 }
  0x31   : > { %v812_v47 = vmul.f32 5.9604645e-08, %v520_v34 }
  0x32   : > { %v519_v58 = vcvt.s32.f32 %v513_v42  ;;  %v847_v4 = vmul.f32 5.9604645e-08, %v521_v53 }
  0x34   : > { %v854_v9 = vmul.f32 5.9604645e-08, %v519_v58 }
  0x88   : > { %v312_v14 = vpop.xlane.xlu2 %311  ;;  %v306_v16 = vpop.xlane.xlu1 %305 }
  0x89   : > { %v322_v19 = vadd.f32 %v317_v12, %v312_v14  ;;  %v320_v20 = vadd.f32 %v317_v12, %v306_v16  ;;  %v299_v22 = vpop.xlane.xlu0 %298 }
  0x8a   : > { %v318_v24 = vadd.f32 %v317_v12, %v299_v22 }
  0x8b   : > { %v797_v26 = vmul.f32 %v322_v19, %v322_v19  ;;  %328 = vst.msk [vmem:[%s795_s14 + $0x10] sm:$0x1] %vm327_vm3, %v320_v20  ;;  %v801_v27 = vmul.f32 %v320_v20, %v320_v20 }
  0x8c   : > { %325 = vst.msk [vmem:[%s795_s14] sm:$0xff] %vm324_vm2, %v318_v24  ;;  %v805_v29 = vmul.f32 %v318_v24, %v318_v24 }
  0x8d   : > { %699 = vrcp.f32 %v797_v26  ;;  %v407_v60 = vand.u32 2147483647, %v797_v26  ;;  %v409_v61 = vand.u32 2147483648, %v797_v26  ;;  %330 = vst.msk [vmem:[%s795_s14 + $0x20] sm:$0xff] %vm324_vm2, %v322_v19  ;;  %v377_v0 = vand.u32 2147483647, %v801_v27 }
  0x8e   : > { %701 = vrcp.f32 %v801_v27  ;;  %v379_v8 = vand.u32 2147483648, %v801_v27  ;;  %vm403_vm4 = vweird.f32 %v797_v26  ;;  %vm373_vm5 = vweird.f32 %v801_v27 }
  0x8f   : > { %703 = vrcp.f32 %v805_v29  ;;  %v347_v10 = vand.u32 2147483647, %v805_v29  ;;  %v349_v11 = vand.u32 2147483648, %v805_v29  ;;  %vm860_vm6 = vcmp.eq.f32.partialorder %v407_v60, 8.507059e+37 }
  0x90   : > { %v315_v37 = vpop.xlane.xlu2 %314  ;;  %v309_v38 = vpop.xlane.xlu1 %308  ;;  %v410_v14 = vor.u32 1.1754944e-38, %v409_v61  ;;  %vm864_vm7 = vcmp.eq.f32.partialorder %v377_v0, 8.507059e+37  ;;  %vm343_vm8 = vweird.f32 %v805_v29  ;;  %v380_v21 = vor.u32 1.1754944e-38, %v379_v8 }
  0x91   : > { %v323_v41 = vadd.f32 %v317_v12, %v315_v37  ;;  %v321_v43 = vadd.f32 %v317_v12, %v309_v38  ;;  %v302_v44 = vpop.xlane.xlu0 %301  ;;  %vm877_vm11 = vcmp.eq.f32.partialorder %v347_v10, 8.507059e+37  ;;  %v350_v24 = vor.u32 1.1754944e-38, %v349_v11 }
  0x92   : > { %v319_v45 = vadd.f32 %v317_v12, %v302_v44  ;;  %v523_v11 = vmul.f32 5.9604645e-08, %v849_v5 }
  0x93   : > { %v810_v46 = vpop.eup %699  ;;  %331 = vst.msk [vmem:[%s795_s14 + $0x28] sm:$0x1] %vm327_vm3, %v323_v41  ;;  %v816_v48 = vmul.f32 %v323_v41, %v323_v41  ;;  %v818_v49 = vmul.f32 %v321_v43, %v321_v43 }
  0x94   : > { %v820_v50 = vpop.eup %701  ;;  %v399_v51 = vmul.f32 %v810_v46, %v797_v26  ;;  %329 = vst.msk [vmem:[%s795_s14 + $0x18] sm:$0xff] %vm324_vm2, %v321_v43  ;;  %v843_v1 = vmul.f32 %v319_v45, %v319_v45  ;;  %vm404_vm10 = vweird.f32 %v810_v46 }
  0x95   : > { %v826_v55 = vpop.eup %703  ;;  %v369_v56 = vmul.f32 %v820_v50, %v801_v27  ;;  %705 = vrcp.f32 %v816_v48  ;;  %326 = vst.msk [vmem:[%s795_s14 + $0x8] sm:$0xff] %vm324_vm2, %v319_v45  ;;  %vm374_vm9 = vweird.f32 %v820_v50  ;;  %v422_v22 = vand.u32 2147483647, %v816_v48  ;;  %vm895_vm15 = vmor %vm403_vm4, %vm404_vm10  ;;  %v430_v45 = vld [vmem:[%s976_s3 + $0x10] sm:$0x1] }
  0x96   : > { %v400_v59 = vsub.f32 1.0, %v399_v51  ;;  %v339_v62 = vmul.f32 %v826_v55, %v805_v29  ;;  %707 = vrcp.f32 %v818_v49  ;;  %v424_v28 = vand.u32 2147483648, %v816_v48  ;;  %vm885_vm12 = vmor %vm373_vm5, %vm374_vm9  ;;  %v429_v51 = vld [vmem:[%s976_s3 + $0x8] sm:$0xff] }
  0x97   : > { %v370_v63 = vsub.f32 1.0, %v369_v56  ;;  %709 = vrcp.f32 %v843_v1  ;;  %v392_v30 = vand.u32 2147483647, %v818_v49  ;;  %vm344_vm13 = vweird.f32 %v826_v55 }
  0x98   : > { %v340_v3 = vsub.f32 1.0, %v339_v62  ;;  %v401_v6 = vmul.f32 %v810_v46, %v400_v59  ;;  %vm418_vm14 = vweird.f32 %v816_v48  ;;  %v394_v33 = vand.u32 2147483648, %v818_v49  ;;  %vm913_vm3 = vmor %vm343_vm8, %vm344_vm13 }
  0x99   : > { %v371_v7 = vmul.f32 %v820_v50, %v370_v63  ;;  %vm906_vm1 = vcmp.eq.f32.partialorder %v422_v22, 8.507059e+37  ;;  %vm388_vm2 = vweird.f32 %v818_v49  ;;  %v425_v42 = vor.u32 1.1754944e-38, %v424_v28 }
  0x9a   : > { %v341_v17 = vmul.f32 %v826_v55, %v340_v3  ;;  %v402_v20 = vadd.f32 %v810_v46, %v401_v6  ;;  %vm917_vm4 = vcmp.eq.f32.partialorder %v392_v30, 8.507059e+37  ;;  %v364_v59 = vand.u32 2147483648, %v843_v1 }
  0x9b   : > { %v706_v12 = vpop.eup %705  ;;  %v372_v16 = vadd.f32 %v820_v50, %v371_v7  ;;  %v362_v63 = vand.u32 2147483647, %v843_v1  ;;  %v522_v7 = vmul.f32 5.9604645e-08, %v830_v57  ;;  %v719_v57 = vmov 0  }
  0x9c   : > { %v414_v18 = vmul.f32 %v706_v12, %v816_v48  ;;  %v708_v19 = vpop.eup %707  ;;  %v342_v35 = vadd.f32 %v826_v55, %v341_v17  ;;  %vm419_vm0 = vweird.f32 %v706_v12  ;;  %v406_v38 = vsel %vm895_vm15, %v810_v46, %v402_v20 }
  0x9d   : > { %v384_v32 = vmul.f32 %v708_v19, %v818_v49  ;;  %v376_v27 = vsel %vm885_vm12, %v820_v50, %v372_v16  ;;  %v710_v37 = vpop.eup %709  ;;  %vm420_vm5 = vmor %vm418_vm14, %vm419_vm0  ;;  %vm389_vm8 = vweird.f32 %v708_v19  ;;  %v395_v50 = vor.u32 1.1754944e-38, %v394_v33 }
  0x9e   : > { %v415_v25 = vsub.f32 1.0, %v414_v18  ;;  %v354_v44 = vmul.f32 %v710_v37, %v843_v1  ;;  %v381_v46 = vsel %vm864_vm7, %v380_v21, %v376_v27  ;;  %v411_v52 = vsel %vm860_vm6, %v410_v14, %v406_v38  ;;  %vm390_vm9 = vmor %vm388_vm2, %vm389_vm8 }
  0x9f   : > { %v385_v26 = vsub.f32 1.0, %v384_v32  ;;  %v346_v53 = vsel %vm913_vm3, %v826_v55, %v342_v35  ;;  %vm359_vm7 = vweird.f32 %v710_v37  ;;  %v433_v60 = vmul.f32 %v430_v45, %v381_v46  ;;  %v428_v55 = vld [vmem:[%s976_s3] sm:$0xff] }
  0xa0   : > { %v416_v36 = vmul.f32 %v706_v12, %v415_v25  ;;  %v355_v56 = vsub.f32 1.0, %v354_v44  ;;  %v435_v0 = vmul.f32 %v429_v51, %v411_v52  ;;  %v351_v3 = vsel %vm877_vm11, %v350_v24, %v346_v53  ;;  %v572_v32 = vld [vmem:[%s269_s24 + $0x4] sm:$0x1] }
  0xa1   : > { %v386_v29 = vmul.f32 %v708_v19, %v385_v26  ;;  %vm358_vm6 = vweird.f32 %v843_v1  ;;  %vm530_vm11 = vcmp.gt.f32.partialorder %v845_v2, %v433_v60  ;;  %v431_v13 = vmul.f32 %v428_v55, %v351_v3 }
  0xa2   : > { %v417_v41 = vadd.f32 %v706_v12, %v416_v36  ;;  %v356_v62 = vmul.f32 %v710_v37, %v355_v56  ;;  %vm360_vm12 = vmor %vm358_vm6, %vm359_vm7  ;;  %vm363_vm14 = vcmp.eq.f32.partialorder %v362_v63, 8.507059e+37  ;;  %vm532_vm15 = vcmp.gt.f32.partialorder %v812_v47, %v435_v0 }
  0xa3   : > { %v387_v58 = vadd.f32 %v708_v19, %v386_v29  ;;  %vm535_vm2 = vmpackc.low %vm530_vm11, %vm530_vm11  ;;  %vm528_vm3 = vcmp.gt.f32.partialorder %v522_v7, %v431_v13  ;;  %vm570_vm6 = vsmask.f32 0 }
  0xa4   : > { %v421_v54 = vsel %vm420_vm5, %v706_v12, %v417_v41  ;;  %v357_v8 = vadd.f32 %v710_v37, %v356_v62  ;;  %v365_v12 = vor.u32 1.1754944e-38, %v364_v59  ;;  %v537_v2 = vsel %vm535_vm2, 16711935, %v719_v57  ;;  %v577_v41 = vld [vmem:[%s269_s24 + $0xa] sm:$0x1] }
  0xa5   : > { %v426_v48 = vsel %vm906_vm1, %v425_v42, %v421_v54  ;;  %v391_v6 = vsel %vm390_vm9, %v708_v19, %v387_v58  ;;  %vm569_vm9 = vcmask 131072  }
  0xa6   : > { %v436_v61 = vmul.f32 %v430_v45, %v426_v48  ;;  %v396_v49 = vsel %vm917_vm4, %v395_v50, %v391_v6  ;;  %v361_v14 = vsel %vm360_vm12, %v710_v37, %v357_v8  ;;  %vm962_vm12 = vmand %vm569_vm9, %vm570_vm6 }
  0xa7   : > { %v434_v10 = vmul.f32 %v428_v55, %v396_v49 }
  0xa8   : > { %vm533_vm10 = vcmp.gt.f32.partialorder %v847_v4, %v436_v61  ;;  %v366_v4 = vsel %vm363_vm14, %v365_v12, %v361_v14 }
  0xa9   : > { %vm541_vm13 = vmpackc.low %vm533_vm10, %vm533_vm10  ;;  %vm531_vm0 = vcmp.gt.f32.partialorder %v854_v9, %v434_v10  ;;  %v432_v15 = vmul.f32 %v429_v51, %v366_v4  ;;  %vm566_vm10 = vcmask 132096  }
  0xaa   : > { %v543_v1 = vsel %vm541_vm13, 16711935, %v719_v57  ;;  %vm540_vm1 = vmpackc.low %vm532_vm15, %vm531_vm0 }
  0xab   : > { %v542_v16 = vsel %vm540_vm1, 16711935, %v719_v57  ;;  %vm529_vm4 = vcmp.gt.f32.partialorder %v523_v11, %v432_v15 }
  0xac   : > { %v544_v5 = vpack.c.b8 %v543_v1, %v542_v16  ;;  %vm534_vm5 = vmpackc.low %vm529_vm4, %vm528_vm3 }
  0xad   : > { %v536_v17 = vsel %vm534_vm5, 16711935, %v719_v57 }
  0xae   : > { %vm545_vm8 = vnez %v544_v5  ;;  %v538_v47 = vpack.c.b8 %v537_v2, %v536_v17 }
  0xaf   : > { %v547_v18 = vsel %vm545_vm8, 16843009, %v719_v57 }
  0xb0   : > { %v551_v19 = vunpack.c.0.s8 %v547_v18  ;;  %v552_v20 = vunpack.c.1.s8 %v547_v18  ;;  %vm539_vm7 = vnez %v538_v47  ;;  %v553_v37 = vunpack.c.2.s8 %v547_v18 }
  0xb1   : > { %v546_v9 = vsel %vm539_vm7, 16843009, %v719_v57 }
  0xb2   : > { %v548_v21 = vunpack.c.0.s8 %v546_v9  ;;  %v549_v22 = vunpack.c.1.s8 %v546_v9  ;;  %v550_v23 = vunpack.c.2.s8 %v546_v9  ;;  %v560_v24 = vpack.c.b16 %v551_v19, %v551_v19 }
  0xb3   : > { %v562_v25 = vpack.c.b16 %v552_v20, %v552_v20  ;;  %v564_v26 = vpack.c.b16 %v553_v37, %v553_v37 }
  0xb4   : > { %v554_v28 = vpack.c.b16 %v548_v21, %v548_v21  ;;  %v556_v30 = vpack.c.b16 %v549_v22, %v549_v22  ;;  %v558_v31 = vpack.c.b16 %v550_v23, %v550_v23  ;;  %v561_v36 = vpack.c.b8 %v560_v24, %v560_v24 }
  0xb5   : > { %v563_v38 = vpack.c.b8 %v562_v25, %v562_v25  ;;  %v565_v40 = vpack.c.b8 %v564_v26, %v564_v26 }
  0xb6   : > { %v555_v34 = vpack.c.b8 %v554_v28, %v554_v28  ;;  %v557_v27 = vpack.c.b8 %v556_v30, %v556_v30  ;;  %v559_v35 = vpack.c.b8 %v558_v31, %v558_v31  ;;  %575 = vst.msk [vmem:[%s269_s24 + $0x6] sm:$0x3] %vm566_vm10, %v561_v36 }
  0xb7   : > { %576 = vst.msk [vmem:[%s269_s24 + $0x8] sm:$0x3] %vm566_vm10, %v563_v38  ;;  %v578_v42 = vsel %vm962_vm12, %v565_v40, %v577_v41 }
  0xb8   : > { %567 = vst.msk [vmem:[%s269_s24] sm:$0x3] %vm566_vm10, %v555_v34  ;;  %v573_v39 = vsel %vm962_vm12, %v559_v35, %v572_v32 }
  0xb9   : > { %568 = vst.msk [vmem:[%s269_s24 + $0x2] sm:$0x3] %vm566_vm10, %v557_v27 }
  0xba   : > { %574 = vst [vmem:[%s269_s24 + $0x4] sm:$0x1] %v573_v39 }
  0xbb   : > { %579 = vst [vmem:[%s269_s24 + $0xa] sm:$0x1] %v578_v42 }
  0xbc PF: > { %s19_s25 = sadd.s32 1, %s717_s25  }
  0xbd   : > { %p16_p4 = scmp.ge.s32.totalorder %s19_s25, 6  }
  0xbf   :  { %18 = sbr.rel (!%p16_p4) target bundleno = 3 (0x3), region = 82 }

</bundles_post_ra>
